<compile_context>
chip_gen: v5e
topology: v5e:2x2
jax: 0.10.0
libtpu: 0.0.40
codegen_flags: <defaults>
</compile_context>

<pallas_src>
import functools

import jax
import jax.numpy as jnp
import numpy as np
from jax.experimental import pallas as pl
from jax.experimental.pallas import tpu as pltpu


def mhdpa_kernel(q_ref, k_ref, v_ref,
                 wq_ref, bq_ref, wk_ref, bk_ref, wv_ref, bv_ref,
                 o_ref, *, n_heads, d_head, eps=1e-5):
    B, Lq, E = q_ref.shape
    Lk = k_ref.shape[1]
    F = n_heads * d_head

    def proj_layernorm(x3, w_ref, b_ref):
        # (B, L, E) -> (B*L, E) @ (E, F) on the MXU (bf16 in, f32 accumulate),
        # then LayerNorm over the feature dim in f32 (no affine).
        Bl, L, _ = x3.shape
        x2 = x3.reshape(Bl * L, E).astype(jnp.bfloat16)
        y = jnp.dot(x2, w_ref[...], preferred_element_type=jnp.float32)
        y = y + b_ref[...]
        mu = jnp.mean(y, axis=-1, keepdims=True)
        var = jnp.mean((y - mu) ** 2, axis=-1, keepdims=True)
        yn = (y - mu) * jax.lax.rsqrt(var + eps)
        return yn.reshape(Bl, L, F)

    q_p = proj_layernorm(q_ref[...], wq_ref, bq_ref)      # (B, Lq, F) f32
    k_p = proj_layernorm(k_ref[...], wk_ref, bk_ref)      # (B, Lk, F) f32
    v_p = proj_layernorm(v_ref[...], wv_ref, bv_ref)      # (B, Lk, F) f32

    # Fold the 1/sqrt(d) score scale into q; cast MXU operands to bf16 once.
    scale = 1.0 / float(np.sqrt(d_head))
    q_bf = (q_p * scale).astype(jnp.bfloat16)
    k_bf = k_p.astype(jnp.bfloat16)
    v_bf = v_p.astype(jnp.bfloat16)

    # TODO(synk): a fully head-batched dot_general (relayout to (B*H, L, d))
    # would remove the remaining per-head lane slices, but the required
    # sublane<->leading-dim 4-D transpose is not reliably lowered by Mosaic;
    # we keep a static head loop over value slices (amortized over the whole
    # batch block) and batch each head's matmuls over B.
    head_outs = []
    for h in range(n_heads):
        lo = h * d_head
        q_h = q_bf[:, :, lo:lo + d_head]                  # (B, Lq, d)
        k_h = k_bf[:, :, lo:lo + d_head]                  # (B, Lk, d)
        v_h = v_bf[:, :, lo:lo + d_head]                  # (B, Lk, d)

        s = jnp.einsum("bqd,bkd->bqk", q_h, k_h,
                       preferred_element_type=jnp.float32)      # (B, Lq, Lk)
        m = jnp.max(s, axis=-1, keepdims=True)
        p = jnp.exp(s - m)
        w = p * pl.reciprocal(jnp.sum(p, axis=-1, keepdims=True), approx=True)
        head_outs.append(
            jnp.einsum("bqk,bkd->bqd", w.astype(jnp.bfloat16), v_h,
                       preferred_element_type=jnp.float32))     # (B, Lq, d)

    # One full-width, lane-dense store (no per-head masked vst.msk).
    out = jnp.concatenate(head_outs, axis=-1)             # (B, Lq, F)
    o_ref[...] = out.astype(o_ref.dtype)


def _pick_batch_block(N, Lq, Lk, E, F, vmem_budget_bytes=8 << 20):
    """Batch elements per grid step: aim for >=256 projection-matmul rows while
    keeping the double-buffered working set modest (fits v7x's 64 MiB VMEM)."""
    target_rows = 256
    b_rows = max(1, target_rows // max(Lq, 1))
    per_batch = 4 * 2 * (Lq * E + 2 * Lk * E + Lq * F)    # f32, double-buffered
    b_vmem = max(1, vmem_budget_bytes // per_batch)
    b = int(min(N, b_rows, b_vmem))
    while N % b:                                          # must divide N evenly
        b -= 1
    return b


def mhdpa_forward(q, k, v, params, *, n_heads):
    """q: (N, Lq, E), k/v: (N, Lk, E). Returns (N, Lq, qkv_dim) in f32."""
    N, Lq, E = q.shape
    Lk = k.shape[1]
    wq, bq, wk, bk, wv, bv = params
    F = wq.shape[0]
    d_head = F // n_heads
    assert d_head * n_heads == F

    B_blk = _pick_batch_block(N, Lq, Lk, E, F)
    grid = (N // B_blk,)

    # Pre-transpose Linear weights (out, in) -> (in, out) and quantize to bf16
    # for the MXU; biases stay f32 as (1, out) rows.
    wq_t = wq.T.astype(jnp.bfloat16)
    wk_t = wk.T.astype(jnp.bfloat16)
    wv_t = wv.T.astype(jnp.bfloat16)
    bq2, bk2, bv2 = bq[None, :], bk[None, :], bv[None, :]

    kernel = functools.partial(mhdpa_kernel, n_heads=n_heads, d_head=d_head)

    weight_spec = pl.BlockSpec((E, F), lambda n: (0, 0))
    bias_spec = pl.BlockSpec((1, F), lambda n: (0, 0))

    return pl.pallas_call(
        kernel,
        out_shape=jax.ShapeDtypeStruct((N, Lq, F), jnp.float32),
        grid=grid,
        in_specs=[
            pl.BlockSpec((B_blk, Lq, E), lambda n: (n, 0, 0)),   # q
            pl.BlockSpec((B_blk, Lk, E), lambda n: (n, 0, 0)),   # k
            pl.BlockSpec((B_blk, Lk, E), lambda n: (n, 0, 0)),   # v
            weight_spec, bias_spec,                              # Wq, bq
            weight_spec, bias_spec,                              # Wk, bk
            weight_spec, bias_spec,                              # Wv, bv
        ],
        out_specs=pl.BlockSpec((B_blk, Lq, F), lambda n: (n, 0, 0)),
        compiler_params=pltpu.CompilerParams(
            dimension_semantics=("parallel",)),
    )(q, k, v, wq_t, bq2, wk_t, bk2, wv_t, bv2)


def _layernorm(y, eps=1e-5):
    mu = jnp.mean(y, axis=-1, keepdims=True)
    var = jnp.mean((y - mu) ** 2, axis=-1, keepdims=True)
    return (y - mu) * jax.lax.rsqrt(var + eps)


def mhdpa_reference(q, k, v, params, *, n_heads, mxu_dtype=jnp.float32):
    """Pure-JAX reference. mxu_dtype=float32 matches the PyTorch module
    exactly; mxu_dtype=bfloat16 mirrors the kernel's MXU quantization points
    (bf16 matmul operands, f32 accumulation, f32 LayerNorm/softmax)."""
    wq, bq, wk, bk, wv, bv = params
    N, Lq, _ = q.shape
    F = wq.shape[0]
    d = F // n_heads
    scale = 1.0 / float(np.sqrt(d))

    def proj(x, w, b):
        y = jnp.einsum("nle,ef->nlf", x.astype(mxu_dtype),
                       w.T.astype(mxu_dtype),
                       preferred_element_type=jnp.float32) + b
        return _layernorm(y)

    def heads(x):
        return x.reshape(N, -1, n_heads, d).transpose(0, 2, 1, 3)

    qh = heads(proj(q, wq, bq) * scale).astype(mxu_dtype)
    kh = heads(proj(k, wk, bk)).astype(mxu_dtype)
    vh = heads(proj(v, wv, bv)).astype(mxu_dtype)
    s = jnp.einsum("nhqd,nhkd->nhqk", qh, kh,
                   preferred_element_type=jnp.float32)
    w = jax.nn.softmax(s, axis=-1)
    out = jnp.einsum("nhqk,nhkd->nhqd", w.astype(mxu_dtype), vh,
                     preferred_element_type=jnp.float32)
    return out.transpose(0, 2, 1, 3).reshape(N, Lq, F)


if __name__ == "__main__":
    # Small shapes consistent with the module.
    N, L, entity_dim, qkv_dim, n_heads = 2, 8, 32, 32, 4

    key = jax.random.PRNGKey(0)
    k_q, k_k, k_v, k_wq, k_bq, k_wk, k_bk, k_wv, k_bv = jax.random.split(key, 9)

    q = jax.random.normal(k_q, (N, L, entity_dim), dtype=jnp.float32)
    k = jax.random.normal(k_k, (N, L, entity_dim), dtype=jnp.float32)
    v = jax.random.normal(k_v, (N, L, entity_dim), dtype=jnp.float32)

    # nn.Linear-style params: weight (out, in), bias (out,).
    lim = 1.0 / np.sqrt(entity_dim)
    params = (
        jax.random.uniform(k_wq, (qkv_dim, entity_dim), minval=-lim, maxval=lim),
        jax.random.uniform(k_bq, (qkv_dim,), minval=-lim, maxval=lim),
        jax.random.uniform(k_wk, (qkv_dim, entity_dim), minval=-lim, maxval=lim),
        jax.random.uniform(k_bk, (qkv_dim,), minval=-lim, maxval=lim),
        jax.random.uniform(k_wv, (qkv_dim, entity_dim), minval=-lim, maxval=lim),
        jax.random.uniform(k_bv, (qkv_dim,), minval=-lim, maxval=lim),
    )

    out = jax.block_until_ready(mhdpa_forward(q, k, v, params, n_heads=n_heads))
    assert out.shape == (N, L, qkv_dim)

    # Primary check: bf16-aware reference (same MXU quantization points).
    ref_bf16 = mhdpa_reference(q, k, v, params, n_heads=n_heads,
                               mxu_dtype=jnp.bfloat16)
    np.testing.assert_allclose(np.asarray(out), np.asarray(ref_bf16),
                               atol=2e-2, rtol=2e-2)

    # Drift bound vs. exact f32 module semantics (bf16 MXU quantization only).
    ref_f32 = mhdpa_reference(q, k, v, params, n_heads=n_heads,
                              mxu_dtype=jnp.float32)
    np.testing.assert_allclose(np.asarray(out), np.asarray(ref_f32),
                               atol=1.5e-1, rtol=1.5e-1)

    print("KERNEL_OK")
</pallas_src>

<mosaic_0001>
module attributes {stable_mosaic.version = 11 : i64} {
  func.func @mhdpa_kernel(%arg0: i32, %arg1: memref<2x8x32xf32, #tpu.memory_space<vmem>>, %arg2: memref<2x8x32xf32, #tpu.memory_space<vmem>>, %arg3: memref<2x8x32xf32, #tpu.memory_space<vmem>>, %arg4: memref<32x32xbf16, #tpu.memory_space<vmem>>, %arg5: memref<1x32xf32, #tpu.memory_space<vmem>>, %arg6: memref<32x32xbf16, #tpu.memory_space<vmem>>, %arg7: memref<1x32xf32, #tpu.memory_space<vmem>>, %arg8: memref<32x32xbf16, #tpu.memory_space<vmem>>, %arg9: memref<1x32xf32, #tpu.memory_space<vmem>>, %arg10: memref<2x8x32xf32, #tpu.memory_space<vmem>>) attributes {dimension_semantics = [#tpu.dimension_semantics<parallel>], iteration_bounds = array<i64: 1>, scalar_prefetch = 0 : i64, scratch_operands = 0 : i64, tpu.core_type = #tpu.core_type<tc>, window_params = [{transform_indices = @transform_0, window_bounds = array<i64: 2, 8, 32>}, {transform_indices = @transform_1, window_bounds = array<i64: 2, 8, 32>}, {transform_indices = @transform_2, window_bounds = array<i64: 2, 8, 32>}, {pipeline_mode = #tpu.pipeline_mode<synchronous>, transform_indices = @transform_3, window_bounds = array<i64: 32, 32>}, {pipeline_mode = #tpu.pipeline_mode<synchronous>, transform_indices = @transform_4, window_bounds = array<i64: 1, 32>}, {pipeline_mode = #tpu.pipeline_mode<synchronous>, transform_indices = @transform_5, window_bounds = array<i64: 32, 32>}, {pipeline_mode = #tpu.pipeline_mode<synchronous>, transform_indices = @transform_6, window_bounds = array<i64: 1, 32>}, {pipeline_mode = #tpu.pipeline_mode<synchronous>, transform_indices = @transform_7, window_bounds = array<i64: 32, 32>}, {pipeline_mode = #tpu.pipeline_mode<synchronous>, transform_indices = @transform_8, window_bounds = array<i64: 1, 32>}, {transform_indices = @transform_9, window_bounds = array<i64: 2, 8, 32>}]} {
    %c0 = arith.constant 0 : index
    %c0_0 = arith.constant 0 : index
    %c0_1 = arith.constant 0 : index
    %0 = vector.load %arg1[%c0, %c0_0, %c0_1] : memref<2x8x32xf32, #tpu.memory_space<vmem>>, vector<2x8x32xf32>
    %1 = vector.shape_cast %0 : vector<2x8x32xf32> to vector<16x32xf32>
    %2 = arith.truncf %1 : vector<16x32xf32> to vector<16x32xbf16>
    %c0_2 = arith.constant 0 : index
    %c0_3 = arith.constant 0 : index
    %3 = vector.load %arg4[%c0_2, %c0_3] : memref<32x32xbf16, #tpu.memory_space<vmem>>, vector<32x32xbf16>
    %cst = arith.constant dense<0.000000e+00> : vector<16x32xf32>
    %4 = tpu.matmul %2, %3, %cst {dimension_numbers = #tpu.dot_dimension_numbers<[1], [0], [0], [1], [0, 0, 1, 1], [], []>} : vector<16x32xbf16>, vector<32x32xbf16>, vector<16x32xf32> -> vector<16x32xf32>
    %c0_4 = arith.constant 0 : index
    %c0_5 = arith.constant 0 : index
    %5 = vector.load %arg5[%c0_4, %c0_5] : memref<1x32xf32, #tpu.memory_space<vmem>>, vector<1x32xf32>
    %6 = vector.broadcast %5 : vector<1x32xf32> to vector<16x32xf32>
    %7 = arith.addf %4, %6 : vector<16x32xf32>
    %cst_6 = arith.constant dense<0.000000e+00> : vector<16xf32>
    %8 = vector.multi_reduction <add>, %7, %cst_6 [1] : vector<16x32xf32> to vector<16xf32>
    %9 = vector.shape_cast %8 : vector<16xf32> to vector<16x1xf32>
    %cst_7 = arith.constant 3.200000e+01 : f32
    %10 = vector.broadcast %cst_7 : f32 to vector<16x1xf32>
    %11 = arith.divf %9, %10 : vector<16x1xf32>
    %12 = vector.broadcast %11 : vector<16x1xf32> to vector<16x32xf32>
    %13 = arith.subf %7, %12 : vector<16x32xf32>
    %14 = arith.mulf %13, %13 : vector<16x32xf32>
    %cst_8 = arith.constant dense<0.000000e+00> : vector<16xf32>
    %15 = vector.multi_reduction <add>, %14, %cst_8 [1] : vector<16x32xf32> to vector<16xf32>
    %16 = vector.shape_cast %15 : vector<16xf32> to vector<16x1xf32>
    %cst_9 = arith.constant 3.200000e+01 : f32
    %17 = vector.broadcast %cst_9 : f32 to vector<16x1xf32>
    %18 = arith.divf %16, %17 : vector<16x1xf32>
    %19 = vector.broadcast %11 : vector<16x1xf32> to vector<16x32xf32>
    %20 = arith.subf %7, %19 : vector<16x32xf32>
    %cst_10 = arith.constant 9.99999974E-6 : f32
    %21 = vector.broadcast %cst_10 : f32 to vector<16x1xf32>
    %22 = arith.addf %18, %21 : vector<16x1xf32>
    %23 = math.rsqrt %22 : vector<16x1xf32>
    %24 = vector.broadcast %23 : vector<16x1xf32> to vector<16x32xf32>
    %25 = arith.mulf %20, %24 : vector<16x32xf32>
    %26 = vector.shape_cast %25 : vector<16x32xf32> to vector<2x8x32xf32>
    %c0_11 = arith.constant 0 : index
    %c0_12 = arith.constant 0 : index
    %c0_13 = arith.constant 0 : index
    %27 = vector.load %arg2[%c0_11, %c0_12, %c0_13] : memref<2x8x32xf32, #tpu.memory_space<vmem>>, vector<2x8x32xf32>
    %28 = vector.shape_cast %27 : vector<2x8x32xf32> to vector<16x32xf32>
    %29 = arith.truncf %28 : vector<16x32xf32> to vector<16x32xbf16>
    %c0_14 = arith.constant 0 : index
    %c0_15 = arith.constant 0 : index
    %30 = vector.load %arg6[%c0_14, %c0_15] : memref<32x32xbf16, #tpu.memory_space<vmem>>, vector<32x32xbf16>
    %cst_16 = arith.constant dense<0.000000e+00> : vector<16x32xf32>
    %31 = tpu.matmul %29, %30, %cst_16 {dimension_numbers = #tpu.dot_dimension_numbers<[1], [0], [0], [1], [0, 0, 1, 1], [], []>} : vector<16x32xbf16>, vector<32x32xbf16>, vector<16x32xf32> -> vector<16x32xf32>
    %c0_17 = arith.constant 0 : index
    %c0_18 = arith.constant 0 : index
    %32 = vector.load %arg7[%c0_17, %c0_18] : memref<1x32xf32, #tpu.memory_space<vmem>>, vector<1x32xf32>
    %33 = vector.broadcast %32 : vector<1x32xf32> to vector<16x32xf32>
    %34 = arith.addf %31, %33 : vector<16x32xf32>
    %cst_19 = arith.constant dense<0.000000e+00> : vector<16xf32>
    %35 = vector.multi_reduction <add>, %34, %cst_19 [1] : vector<16x32xf32> to vector<16xf32>
    %36 = vector.shape_cast %35 : vector<16xf32> to vector<16x1xf32>
    %cst_20 = arith.constant 3.200000e+01 : f32
    %37 = vector.broadcast %cst_20 : f32 to vector<16x1xf32>
    %38 = arith.divf %36, %37 : vector<16x1xf32>
    %39 = vector.broadcast %38 : vector<16x1xf32> to vector<16x32xf32>
    %40 = arith.subf %34, %39 : vector<16x32xf32>
    %41 = arith.mulf %40, %40 : vector<16x32xf32>
    %cst_21 = arith.constant dense<0.000000e+00> : vector<16xf32>
    %42 = vector.multi_reduction <add>, %41, %cst_21 [1] : vector<16x32xf32> to vector<16xf32>
    %43 = vector.shape_cast %42 : vector<16xf32> to vector<16x1xf32>
    %cst_22 = arith.constant 3.200000e+01 : f32
    %44 = vector.broadcast %cst_22 : f32 to vector<16x1xf32>
    %45 = arith.divf %43, %44 : vector<16x1xf32>
    %46 = vector.broadcast %38 : vector<16x1xf32> to vector<16x32xf32>
    %47 = arith.subf %34, %46 : vector<16x32xf32>
    %cst_23 = arith.constant 9.99999974E-6 : f32
    %48 = vector.broadcast %cst_23 : f32 to vector<16x1xf32>
    %49 = arith.addf %45, %48 : vector<16x1xf32>
    %50 = math.rsqrt %49 : vector<16x1xf32>
    %51 = vector.broadcast %50 : vector<16x1xf32> to vector<16x32xf32>
    %52 = arith.mulf %47, %51 : vector<16x32xf32>
    %53 = vector.shape_cast %52 : vector<16x32xf32> to vector<2x8x32xf32>
    %c0_24 = arith.constant 0 : index
    %c0_25 = arith.constant 0 : index
    %c0_26 = arith.constant 0 : index
    %54 = vector.load %arg3[%c0_24, %c0_25, %c0_26] : memref<2x8x32xf32, #tpu.memory_space<vmem>>, vector<2x8x32xf32>
    %55 = vector.shape_cast %54 : vector<2x8x32xf32> to vector<16x32xf32>
    %56 = arith.truncf %55 : vector<16x32xf32> to vector<16x32xbf16>
    %c0_27 = arith.constant 0 : index
    %c0_28 = arith.constant 0 : index
    %57 = vector.load %arg8[%c0_27, %c0_28] : memref<32x32xbf16, #tpu.memory_space<vmem>>, vector<32x32xbf16>
    %cst_29 = arith.constant dense<0.000000e+00> : vector<16x32xf32>
    %58 = tpu.matmul %56, %57, %cst_29 {dimension_numbers = #tpu.dot_dimension_numbers<[1], [0], [0], [1], [0, 0, 1, 1], [], []>} : vector<16x32xbf16>, vector<32x32xbf16>, vector<16x32xf32> -> vector<16x32xf32>
    %c0_30 = arith.constant 0 : index
    %c0_31 = arith.constant 0 : index
    %59 = vector.load %arg9[%c0_30, %c0_31] : memref<1x32xf32, #tpu.memory_space<vmem>>, vector<1x32xf32>
    %60 = vector.broadcast %59 : vector<1x32xf32> to vector<16x32xf32>
    %61 = arith.addf %58, %60 : vector<16x32xf32>
    %cst_32 = arith.constant dense<0.000000e+00> : vector<16xf32>
    %62 = vector.multi_reduction <add>, %61, %cst_32 [1] : vector<16x32xf32> to vector<16xf32>
    %63 = vector.shape_cast %62 : vector<16xf32> to vector<16x1xf32>
    %cst_33 = arith.constant 3.200000e+01 : f32
    %64 = vector.broadcast %cst_33 : f32 to vector<16x1xf32>
    %65 = arith.divf %63, %64 : vector<16x1xf32>
    %66 = vector.broadcast %65 : vector<16x1xf32> to vector<16x32xf32>
    %67 = arith.subf %61, %66 : vector<16x32xf32>
    %68 = arith.mulf %67, %67 : vector<16x32xf32>
    %cst_34 = arith.constant dense<0.000000e+00> : vector<16xf32>
    %69 = vector.multi_reduction <add>, %68, %cst_34 [1] : vector<16x32xf32> to vector<16xf32>
    %70 = vector.shape_cast %69 : vector<16xf32> to vector<16x1xf32>
    %cst_35 = arith.constant 3.200000e+01 : f32
    %71 = vector.broadcast %cst_35 : f32 to vector<16x1xf32>
    %72 = arith.divf %70, %71 : vector<16x1xf32>
    %73 = vector.broadcast %65 : vector<16x1xf32> to vector<16x32xf32>
    %74 = arith.subf %61, %73 : vector<16x32xf32>
    %cst_36 = arith.constant 9.99999974E-6 : f32
    %75 = vector.broadcast %cst_36 : f32 to vector<16x1xf32>
    %76 = arith.addf %72, %75 : vector<16x1xf32>
    %77 = math.rsqrt %76 : vector<16x1xf32>
    %78 = vector.broadcast %77 : vector<16x1xf32> to vector<16x32xf32>
    %79 = arith.mulf %74, %78 : vector<16x32xf32>
    %80 = vector.shape_cast %79 : vector<16x32xf32> to vector<2x8x32xf32>
    %cst_37 = arith.constant 0.353553385 : f32
    %81 = vector.broadcast %cst_37 : f32 to vector<2x8x32xf32>
    %82 = arith.mulf %26, %81 : vector<2x8x32xf32>
    %83 = arith.truncf %82 : vector<2x8x32xf32> to vector<2x8x32xbf16>
    %84 = arith.truncf %53 : vector<2x8x32xf32> to vector<2x8x32xbf16>
    %85 = arith.truncf %80 : vector<2x8x32xf32> to vector<2x8x32xbf16>
    %86 = vector.extract_strided_slice %83 {offsets = [0, 0, 0], sizes = [2, 8, 8], strides = [1, 1, 1]} : vector<2x8x32xbf16> to vector<2x8x8xbf16>
    %87 = vector.extract_strided_slice %84 {offsets = [0, 0, 0], sizes = [2, 8, 8], strides = [1, 1, 1]} : vector<2x8x32xbf16> to vector<2x8x8xbf16>
    %88 = vector.extract_strided_slice %85 {offsets = [0, 0, 0], sizes = [2, 8, 8], strides = [1, 1, 1]} : vector<2x8x32xbf16> to vector<2x8x8xbf16>
    "tpu.trace_start"() <{level = 10 : i32, message = "bqd,bkd->bqk"}> : () -> ()
    %cst_38 = arith.constant dense<0.000000e+00> : vector<2x8x8xf32>
    %89 = tpu.matmul %86, %87, %cst_38 {dimension_numbers = #tpu.dot_dimension_numbers<[2], [2], [1], [1], [0, 0, 0, 1, 1, 1], [0], [0]>} : vector<2x8x8xbf16>, vector<2x8x8xbf16>, vector<2x8x8xf32> -> vector<2x8x8xf32>
    "tpu.trace_stop"() : () -> ()
    %cst_39 = arith.constant dense<0xFF800000> : vector<2x8xf32>
    %90 = vector.multi_reduction <maximumf>, %89, %cst_39 [2] : vector<2x8x8xf32> to vector<2x8xf32>
    %91 = vector.shape_cast %90 : vector<2x8xf32> to vector<2x8x1xf32>
    %92 = vector.broadcast %91 : vector<2x8x1xf32> to vector<2x8x8xf32>
    %93 = arith.subf %89, %92 : vector<2x8x8xf32>
    %94 = math.exp %93 : vector<2x8x8xf32>
    %cst_40 = arith.constant dense<0.000000e+00> : vector<2x8xf32>
    %95 = vector.multi_reduction <add>, %94, %cst_40 [2] : vector<2x8x8xf32> to vector<2x8xf32>
    %96 = vector.shape_cast %95 : vector<2x8xf32> to vector<2x8x1xf32>
    %97 = tpu.reciprocal %96 {approx = true} : vector<2x8x1xf32> -> vector<2x8x1xf32>
    %98 = vector.broadcast %97 : vector<2x8x1xf32> to vector<2x8x8xf32>
    %99 = arith.mulf %94, %98 : vector<2x8x8xf32>
    %100 = arith.truncf %99 : vector<2x8x8xf32> to vector<2x8x8xbf16>
    "tpu.trace_start"() <{level = 10 : i32, message = "bqk,bkd->bqd"}> : () -> ()
    %cst_41 = arith.constant dense<0.000000e+00> : vector<2x8x8xf32>
    %101 = tpu.matmul %100, %88, %cst_41 {dimension_numbers = #tpu.dot_dimension_numbers<[2], [1], [1], [2], [0, 0, 0, 1, 1, 2], [0], [0]>} : vector<2x8x8xbf16>, vector<2x8x8xbf16>, vector<2x8x8xf32> -> vector<2x8x8xf32>
    "tpu.trace_stop"() : () -> ()
    %102 = vector.extract_strided_slice %83 {offsets = [0, 0, 8], sizes = [2, 8, 8], strides = [1, 1, 1]} : vector<2x8x32xbf16> to vector<2x8x8xbf16>
    %103 = vector.extract_strided_slice %84 {offsets = [0, 0, 8], sizes = [2, 8, 8], strides = [1, 1, 1]} : vector<2x8x32xbf16> to vector<2x8x8xbf16>
    %104 = vector.extract_strided_slice %85 {offsets = [0, 0, 8], sizes = [2, 8, 8], strides = [1, 1, 1]} : vector<2x8x32xbf16> to vector<2x8x8xbf16>
    "tpu.trace_start"() <{level = 10 : i32, message = "bqd,bkd->bqk"}> : () -> ()
    %cst_42 = arith.constant dense<0.000000e+00> : vector<2x8x8xf32>
    %105 = tpu.matmul %102, %103, %cst_42 {dimension_numbers = #tpu.dot_dimension_numbers<[2], [2], [1], [1], [0, 0, 0, 1, 1, 1], [0], [0]>} : vector<2x8x8xbf16>, vector<2x8x8xbf16>, vector<2x8x8xf32> -> vector<2x8x8xf32>
    "tpu.trace_stop"() : () -> ()
    %cst_43 = arith.constant dense<0xFF800000> : vector<2x8xf32>
    %106 = vector.multi_reduction <maximumf>, %105, %cst_43 [2] : vector<2x8x8xf32> to vector<2x8xf32>
    %107 = vector.shape_cast %106 : vector<2x8xf32> to vector<2x8x1xf32>
    %108 = vector.broadcast %107 : vector<2x8x1xf32> to vector<2x8x8xf32>
    %109 = arith.subf %105, %108 : vector<2x8x8xf32>
    %110 = math.exp %109 : vector<2x8x8xf32>
    %cst_44 = arith.constant dense<0.000000e+00> : vector<2x8xf32>
    %111 = vector.multi_reduction <add>, %110, %cst_44 [2] : vector<2x8x8xf32> to vector<2x8xf32>
    %112 = vector.shape_cast %111 : vector<2x8xf32> to vector<2x8x1xf32>
    %113 = tpu.reciprocal %112 {approx = true} : vector<2x8x1xf32> -> vector<2x8x1xf32>
    %114 = vector.broadcast %113 : vector<2x8x1xf32> to vector<2x8x8xf32>
    %115 = arith.mulf %110, %114 : vector<2x8x8xf32>
    %116 = arith.truncf %115 : vector<2x8x8xf32> to vector<2x8x8xbf16>
    "tpu.trace_start"() <{level = 10 : i32, message = "bqk,bkd->bqd"}> : () -> ()
    %cst_45 = arith.constant dense<0.000000e+00> : vector<2x8x8xf32>
    %117 = tpu.matmul %116, %104, %cst_45 {dimension_numbers = #tpu.dot_dimension_numbers<[2], [1], [1], [2], [0, 0, 0, 1, 1, 2], [0], [0]>} : vector<2x8x8xbf16>, vector<2x8x8xbf16>, vector<2x8x8xf32> -> vector<2x8x8xf32>
    "tpu.trace_stop"() : () -> ()
    %118 = vector.extract_strided_slice %83 {offsets = [0, 0, 16], sizes = [2, 8, 8], strides = [1, 1, 1]} : vector<2x8x32xbf16> to vector<2x8x8xbf16>
    %119 = vector.extract_strided_slice %84 {offsets = [0, 0, 16], sizes = [2, 8, 8], strides = [1, 1, 1]} : vector<2x8x32xbf16> to vector<2x8x8xbf16>
    %120 = vector.extract_strided_slice %85 {offsets = [0, 0, 16], sizes = [2, 8, 8], strides = [1, 1, 1]} : vector<2x8x32xbf16> to vector<2x8x8xbf16>
    "tpu.trace_start"() <{level = 10 : i32, message = "bqd,bkd->bqk"}> : () -> ()
    %cst_46 = arith.constant dense<0.000000e+00> : vector<2x8x8xf32>
    %121 = tpu.matmul %118, %119, %cst_46 {dimension_numbers = #tpu.dot_dimension_numbers<[2], [2], [1], [1], [0, 0, 0, 1, 1, 1], [0], [0]>} : vector<2x8x8xbf16>, vector<2x8x8xbf16>, vector<2x8x8xf32> -> vector<2x8x8xf32>
    "tpu.trace_stop"() : () -> ()
    %cst_47 = arith.constant dense<0xFF800000> : vector<2x8xf32>
    %122 = vector.multi_reduction <maximumf>, %121, %cst_47 [2] : vector<2x8x8xf32> to vector<2x8xf32>
    %123 = vector.shape_cast %122 : vector<2x8xf32> to vector<2x8x1xf32>
    %124 = vector.broadcast %123 : vector<2x8x1xf32> to vector<2x8x8xf32>
    %125 = arith.subf %121, %124 : vector<2x8x8xf32>
    %126 = math.exp %125 : vector<2x8x8xf32>
    %cst_48 = arith.constant dense<0.000000e+00> : vector<2x8xf32>
    %127 = vector.multi_reduction <add>, %126, %cst_48 [2] : vector<2x8x8xf32> to vector<2x8xf32>
    %128 = vector.shape_cast %127 : vector<2x8xf32> to vector<2x8x1xf32>
    %129 = tpu.reciprocal %128 {approx = true} : vector<2x8x1xf32> -> vector<2x8x1xf32>
    %130 = vector.broadcast %129 : vector<2x8x1xf32> to vector<2x8x8xf32>
    %131 = arith.mulf %126, %130 : vector<2x8x8xf32>
    %132 = arith.truncf %131 : vector<2x8x8xf32> to vector<2x8x8xbf16>
    "tpu.trace_start"() <{level = 10 : i32, message = "bqk,bkd->bqd"}> : () -> ()
    %cst_49 = arith.constant dense<0.000000e+00> : vector<2x8x8xf32>
    %133 = tpu.matmul %132, %120, %cst_49 {dimension_numbers = #tpu.dot_dimension_numbers<[2], [1], [1], [2], [0, 0, 0, 1, 1, 2], [0], [0]>} : vector<2x8x8xbf16>, vector<2x8x8xbf16>, vector<2x8x8xf32> -> vector<2x8x8xf32>
    "tpu.trace_stop"() : () -> ()
    %134 = vector.extract_strided_slice %83 {offsets = [0, 0, 24], sizes = [2, 8, 8], strides = [1, 1, 1]} : vector<2x8x32xbf16> to vector<2x8x8xbf16>
    %135 = vector.extract_strided_slice %84 {offsets = [0, 0, 24], sizes = [2, 8, 8], strides = [1, 1, 1]} : vector<2x8x32xbf16> to vector<2x8x8xbf16>
    %136 = vector.extract_strided_slice %85 {offsets = [0, 0, 24], sizes = [2, 8, 8], strides = [1, 1, 1]} : vector<2x8x32xbf16> to vector<2x8x8xbf16>
    "tpu.trace_start"() <{level = 10 : i32, message = "bqd,bkd->bqk"}> : () -> ()
    %cst_50 = arith.constant dense<0.000000e+00> : vector<2x8x8xf32>
    %137 = tpu.matmul %134, %135, %cst_50 {dimension_numbers = #tpu.dot_dimension_numbers<[2], [2], [1], [1], [0, 0, 0, 1, 1, 1], [0], [0]>} : vector<2x8x8xbf16>, vector<2x8x8xbf16>, vector<2x8x8xf32> -> vector<2x8x8xf32>
    "tpu.trace_stop"() : () -> ()
    %cst_51 = arith.constant dense<0xFF800000> : vector<2x8xf32>
    %138 = vector.multi_reduction <maximumf>, %137, %cst_51 [2] : vector<2x8x8xf32> to vector<2x8xf32>
    %139 = vector.shape_cast %138 : vector<2x8xf32> to vector<2x8x1xf32>
    %140 = vector.broadcast %139 : vector<2x8x1xf32> to vector<2x8x8xf32>
    %141 = arith.subf %137, %140 : vector<2x8x8xf32>
    %142 = math.exp %141 : vector<2x8x8xf32>
    %cst_52 = arith.constant dense<0.000000e+00> : vector<2x8xf32>
    %143 = vector.multi_reduction <add>, %142, %cst_52 [2] : vector<2x8x8xf32> to vector<2x8xf32>
    %144 = vector.shape_cast %143 : vector<2x8xf32> to vector<2x8x1xf32>
    %145 = tpu.reciprocal %144 {approx = true} : vector<2x8x1xf32> -> vector<2x8x1xf32>
    %146 = vector.broadcast %145 : vector<2x8x1xf32> to vector<2x8x8xf32>
    %147 = arith.mulf %142, %146 : vector<2x8x8xf32>
    %148 = arith.truncf %147 : vector<2x8x8xf32> to vector<2x8x8xbf16>
    "tpu.trace_start"() <{level = 10 : i32, message = "bqk,bkd->bqd"}> : () -> ()
    %cst_53 = arith.constant dense<0.000000e+00> : vector<2x8x8xf32>
    %149 = tpu.matmul %148, %136, %cst_53 {dimension_numbers = #tpu.dot_dimension_numbers<[2], [1], [1], [2], [0, 0, 0, 1, 1, 2], [0], [0]>} : vector<2x8x8xbf16>, vector<2x8x8xbf16>, vector<2x8x8xf32> -> vector<2x8x8xf32>
    "tpu.trace_stop"() : () -> ()
    %150 = tpu.concatenate %101, %117, %133, %149 in 2 : vector<2x8x8xf32>, vector<2x8x8xf32>, vector<2x8x8xf32>, vector<2x8x8xf32> -> vector<2x8x32xf32>
    %c0_54 = arith.constant 0 : index
    %c0_55 = arith.constant 0 : index
    %c0_56 = arith.constant 0 : index
    %151 = vector.load %arg10[%c0_54, %c0_55, %c0_56] : memref<2x8x32xf32, #tpu.memory_space<vmem>>, vector<2x8x32xf32>
    tpu.vector_store %arg10[%c0_54, %c0_55, %c0_56], %150 {strides = array<i32>} : memref<2x8x32xf32, #tpu.memory_space<vmem>>, vector<2x8x32xf32>,
    return
  }
  func.func @transform_0(%arg0: i32) -> (i32, i32, i32) {
    %c0_i32 = arith.constant 0 : i32
    %c0_i32_0 = arith.constant 0 : i32
    %c0_i32_1 = arith.constant 0 : i32
    return %arg0, %c0_i32, %c0_i32_0 : i32, i32, i32
  }
  func.func @transform_1(%arg0: i32) -> (i32, i32, i32) {
    %c0_i32 = arith.constant 0 : i32
    %c0_i32_0 = arith.constant 0 : i32
    %c0_i32_1 = arith.constant 0 : i32
    return %arg0, %c0_i32, %c0_i32_0 : i32, i32, i32
  }
  func.func @transform_2(%arg0: i32) -> (i32, i32, i32) {
    %c0_i32 = arith.constant 0 : i32
    %c0_i32_0 = arith.constant 0 : i32
    %c0_i32_1 = arith.constant 0 : i32
    return %arg0, %c0_i32, %c0_i32_0 : i32, i32, i32
  }
  func.func @transform_3(%arg0: i32) -> (i32, i32) {
    %c0_i32 = arith.constant 0 : i32
    %c0_i32_0 = arith.constant 0 : i32
    %c0_i32_1 = arith.constant 0 : i32
    return %c0_i32, %c0_i32_0 : i32, i32
  }
  func.func @transform_4(%arg0: i32) -> (i32, i32) {
    %c0_i32 = arith.constant 0 : i32
    %c0_i32_0 = arith.constant 0 : i32
    %c0_i32_1 = arith.constant 0 : i32
    return %c0_i32, %c0_i32_0 : i32, i32
  }
  func.func @transform_5(%arg0: i32) -> (i32, i32) {
    %c0_i32 = arith.constant 0 : i32
    %c0_i32_0 = arith.constant 0 : i32
    %c0_i32_1 = arith.constant 0 : i32
    return %c0_i32, %c0_i32_0 : i32, i32
  }
  func.func @transform_6(%arg0: i32) -> (i32, i32) {
    %c0_i32 = arith.constant 0 : i32
    %c0_i32_0 = arith.constant 0 : i32
    %c0_i32_1 = arith.constant 0 : i32
    return %c0_i32, %c0_i32_0 : i32, i32
  }
  func.func @transform_7(%arg0: i32) -> (i32, i32) {
    %c0_i32 = arith.constant 0 : i32
    %c0_i32_0 = arith.constant 0 : i32
    %c0_i32_1 = arith.constant 0 : i32
    return %c0_i32, %c0_i32_0 : i32, i32
  }
  func.func @transform_8(%arg0: i32) -> (i32, i32) {
    %c0_i32 = arith.constant 0 : i32
    %c0_i32_0 = arith.constant 0 : i32
    %c0_i32_1 = arith.constant 0 : i32
    return %c0_i32, %c0_i32_0 : i32, i32
  }
  func.func @transform_9(%arg0: i32) -> (i32, i32, i32) {
    %c0_i32 = arith.constant 0 : i32
    %c0_i32_0 = arith.constant 0 : i32
    %c0_i32_1 = arith.constant 0 : i32
    return %arg0, %c0_i32, %c0_i32_0 : i32, i32, i32
  }
}

</mosaic_0001>

<bundles_post_ra>
// kernel: tpu_custom_call.1
= control target key start
LH: loop header
LB: loop body
LE: loop exit
PB: predicated region body
PF: predicated region fallthrough
CT: control target
= control target key end

     0   :  { %14 = vsyncpa [#allocation3], 0  ;;  %s1479_s0 = inlined_call_operand.hbm [shape: f32[2,8,32], index: 0, kind: input, shape index: {}]   ;;  %s1480_s1 = inlined_call_operand.hbm [shape: f32[2,8,32], index: 1, kind: input, shape index: {}]   ;;  %s1481_s2 = inlined_call_operand.hbm [shape: f32[2,8,32], index: 2, kind: input, shape index: {}]   ;;  %s1482_s3 = inlined_call_operand.hbm [shape: bf16[32,32], index: 3, kind: input, shape index: {}]   ;;  %s1483_s4 = inlined_call_operand.vmem [shape: f32[1,32], index: 4, kind: input, shape index: {}]   ;;  %s1484_s5 = inlined_call_operand.hbm [shape: bf16[32,32], index: 5, kind: input, shape index: {}]   ;;  %s1485_s6 = inlined_call_operand.vmem [shape: f32[1,32], index: 6, kind: input, shape index: {}]   ;;  %s1486_s7 = inlined_call_operand.hbm [shape: bf16[32,32], index: 7, kind: input, shape index: {}]   ;;  %s1487_s8 = inlined_call_operand.vmem [shape: f32[1,32], index: 8, kind: input, shape index: {}]   ;;  %s1488_s9 = inlined_call_operand.hbm [shape: f32[2,8,32], index: 9, kind: output, shape index: {}]  }
   0x1   :  { %15 = vsyncpa [#allocation6], 0 }
   0x2   :  { %16 = vsyncpa [#allocation9], 0 }
   0x3   :  { %17 = vsyncpa [#allocation12], 0 }
   0x4   :  { %18 = vsyncpa [#allocation4], 0  ;;  %s36_s11 = sshll.u32 %s1480_s1, 4  ;;  %s1201_s12 = smov [#allocation5]   ;;  %s37_s11 = int_to_ptr.hbm [resolvable:$true] %s36_s11 }
   0x5   :  { %s38_s13 = sshll.u32 %s1201_s12, 4  ;;  %s62_s16 = sshll.u32 %s1482_s3, 4  ;;  %s39_s13 = int_to_ptr.vmem [resolvable:$true] %s38_s13  ;;  %s63_s16 = int_to_ptr.hbm [resolvable:$true] %s62_s16 }
   0x6   :  { %s1202_s17 = smov 128   ;;  %s1203_s18 = smov 8  }
   0x7   :  { %44 = dma.hbm_to_vmem [thread:$0]  %s37_s11, 256, %s39_s13, [#allocation6], %s1202_s17, %s1202_s17, %s1203_s18  }
   0x8   :  { %s1204_s19 = smov [#allocation8]   ;;  %s1205_s21 = smov 64  }
   0x9   :  { %s64_s20 = sshll.u32 %s1204_s19, 4  ;;  %s1206_s1 = smov 4   ;;  %s65_s20 = int_to_ptr.vmem [resolvable:$true] %s64_s20 }
   0xa   :  { %70 = dma.hbm_to_vmem [thread:$0]  %s63_s16, 256, %s65_s20, [#allocation9], %s1205_s21, %s1205_s21, %s1206_s1  }
   0xb   :  { %s23_s24 = sshll.u32 %s1479_s0, 4  ;;  %s1207_s25 = smov [#allocation2]   ;;  %s24_s24 = int_to_ptr.hbm [resolvable:$true] %s23_s24 }
   0xc   :  { %s25_s3 = sshll.u32 %s1207_s25, 4  ;;  %s49_s28 = sshll.u32 %s1481_s2, 4  ;;  %s26_s3 = int_to_ptr.vmem [resolvable:$true] %s25_s3  ;;  %s50_s28 = int_to_ptr.hbm [resolvable:$true] %s49_s28 }
   0xd   :  { %31 = dma.hbm_to_vmem [thread:$0]  %s24_s24, 256, %s26_s3, [#allocation3], %s1202_s17, %s1202_s17, %s1203_s18  }
   0xe   :  { %s1208_s29 = smov [#allocation7]   ;;  %s77_s12 = sshll.u32 %s1484_s5, 4  ;;  %s78_s12 = int_to_ptr.hbm [resolvable:$true] %s77_s12 }
   0xf   :  { %s51_s30 = sshll.u32 %s1208_s29, 4  ;;  %s92_s2 = sshll.u32 %s1486_s7, 4  ;;  %s52_s30 = int_to_ptr.vmem [resolvable:$true] %s51_s30  ;;  %s93_s2 = int_to_ptr.hbm [resolvable:$true] %s92_s2 }
  0x10   :  { %57 = dma.hbm_to_vmem [thread:$0]  %s50_s28, 256, %s52_s30, [#allocation6], %s1202_s17, %s1202_s17, %s1203_s18  }
  0x11   :  { %s1209_s14 = smov [#allocation10]   ;;  %s1210_s16 = smov [#allocation11]  }
  0x12   :  { %s79_s15 = sshll.u32 %s1209_s14, 4  ;;  %s94_s19 = sshll.u32 %s1210_s16, 4  ;;  %s80_s15 = int_to_ptr.vmem [resolvable:$true] %s79_s15  ;;  %s95_s19 = int_to_ptr.vmem [resolvable:$true] %s94_s19 }
  0x13   :  { %85 = dma.hbm_to_vmem [thread:$0]  %s78_s12, 256, %s80_s15, [#allocation9], %s1205_s21, %s1205_s21, %s1206_s1  }
  0x14   :  { %100 = dma.hbm_to_vmem [thread:$0]  %s93_s2, 256, %s95_s19, [#allocation12], %s1205_s21, %s1205_s21, %s1206_s1  }
  0x15   :  { %1191 = dma.done.wait [#allocation3], 256  }
  0x16   :  { %1192 = vsyncadd [#allocation3], 4294967040 }
  0x17   :  { %1193 = dma.done.wait [#allocation6], 512  }
  0x18   :  { %1194 = vsyncadd [#allocation6], 4294966784 }
  0x19   :  { %1195 = dma.done.wait [#allocation9], 512  }
  0x1a   :  { %1196 = vsyncadd [#allocation9], 4294966784 }
  0x1b   :  { %1197 = dma.done.wait [#allocation12], 256  }
  0x1c   :  { %1198 = vsyncadd [#allocation12], 4294967040  ;;  %v952_v0 = vld [vmem:[#allocation8 + $0x8] sm:$0xff]  ;;  %v954_v1 = vld [vmem:[#allocation10 + $0x8] sm:$0xff]  ;;  %vm151_vm0 = vcmask 261120   ;;  %v1211_v24 = vmov 32.0  }
  0x1d   :  { %v951_v2 = vld [vmem:[#allocation8] sm:$0xff]  ;;  %v953_v3 = vld [vmem:[#allocation10] sm:$0xff]  ;;  %v129_v5 = vld [vmem:[#allocation2 + $0x8] sm:$0xff]  ;;  %161 = vmatpush.bf16.msra.mxu0 %v952_v0  ;;  %252 = vmatpush.bf16.msra.mxu1 %v954_v1  ;;  %977 = vrcp.f32 %v1211_v24  ;;  %vm396_vm8 = vcmask 64512   ;;  %s1214_s1 = smov 104   ;;  %s1216_s24 = smov 24  }
  0x1e   :  { %v128_v4 = vld [vmem:[#allocation2] sm:$0xff]  ;;  %v220_v6 = vld [vmem:[#allocation5] sm:$0xff]  ;;  %v221_v7 = vld [vmem:[#allocation5 + $0x8] sm:$0xff]  ;;  %s1217_s25 = smov [#allocation13]   ;;  %s892_s28 = sshll.u32 %s1488_s9, 4  ;;  %s893_s28 = int_to_ptr.hbm [resolvable:$true] %s892_s28 }
  0x1f   :  { %v130_v8 = vpack.c.bf16 %v129_v5, %v128_v4  ;;  %v222_v9 = vpack.c.bf16 %v221_v7, %v220_v6  ;;  %v974_v10 = vld [vmem:[%s1483_s4] ss:$0 sm:$0xff]  ;;  %v956_v27 = vld [vmem:[#allocation11 + $0x8] sm:$0xff]  ;;  %v955_v29 = vld [vmem:[#allocation11] sm:$0xff]  ;;  %s1212_s4 = smov 120   ;;  %s890_s3 = sshll.u32 %s1217_s25, 4  ;;  %s891_s3 = int_to_ptr.vmem [resolvable:$true] %s890_s3 }
  0x20   :  { %v975_v11 = vld [vmem:[%s1485_s6] ss:$0 sm:$0xff]  ;;  %336 = vmatpush.bf16.msra.mxu2 %v956_v27  ;;  %v305_v31 = vld [vmem:[#allocation7 + $0x8] sm:$0xff]  ;;  %s1213_s6 = smov 112  }
  0x21   :  { %162 = vmatpush.bf16.msra.mxu0 %v951_v2  ;;  %253 = vmatpush.bf16.msra.mxu1 %v953_v3  ;;  %v304_v30 = vld [vmem:[#allocation7] sm:$0xff] }
  0x22   :  { %v306_v32 = vpack.c.bf16 %v305_v31, %v304_v30 }
  0x23   :  { %v978_v25 = vpop.eup %977 }
  0x24   :  { %916 = vmatmul.msk.bf16.vlgmr.msra.gmra.mxu0 %vm151_vm0, %v130_v8  ;;  %925 = vmatmul.msk.bf16.vlgmr.msra.gmra.mxu1 %vm151_vm0, %v222_v9  ;;  %v176_v26 = vmul.f32 32.0, %v978_v25  ;;  %vm180_vm1 = vweird.f32 %v978_v25 }
  0x25   :  { %337 = vmatpush.bf16.msra.mxu2 %v955_v29 }
  0x26   :  { %v177_v28 = vsub.f32 1.0, %v176_v26 }
  0x28   :  { %v178_v33 = vmul.f32 %v978_v25, %v177_v28  ;;  %934 = vmatmul.msk.bf16.vlgmr.msra.gmra.mxu2 %vm151_vm0, %v306_v32 }
  0x2a   :  { %v179_v34 = vadd.f32 %v978_v25, %v178_v33 }
  0x2c   :  { %v1308_v35 = vsel %vm180_vm1, %v978_v25, %v179_v34 }
  0xa1   :  { %v164_v12 = vpop.f32.mrf.mxu0  ;;  %v255_v13 = vpop.f32.mrf.mxu1 }
  0xa2   :  { %v165_v14 = vadd.f32 %v974_v10, %v164_v12  ;;  %v256_v15 = vadd.f32 %v975_v11, %v255_v13 }
  0xa4   :  { %v260_v16 = vsel %vm151_vm0, %v256_v15, 0.0  ;;  %v169_v17 = vsel %vm151_vm0, %v165_v14, 0.0 }
  0xa5   :  { %261 = vadd.xlane.f32.xlu0 %v260_v16  ;;  %170 = vadd.xlane.f32.xlu1 %v169_v17 }
  0xa9   :  { %v166_v18 = vpop.f32.mrf.mxu0  ;;  %v257_v19 = vpop.f32.mrf.mxu1 }
  0xaa   :  { %v167_v20 = vadd.f32 %v974_v10, %v166_v18  ;;  %v258_v21 = vadd.f32 %v975_v11, %v257_v19 }
  0xac   :  { %v263_v22 = vsel %vm151_vm0, %v258_v21, 0.0  ;;  %v172_v23 = vsel %vm151_vm0, %v167_v20, 0.0 }
  0xad   :  { %264 = vadd.xlane.f32.xlu0 %v263_v22  ;;  %173 = vadd.xlane.f32.xlu1 %v172_v23 }
 0x118   :  { %v262_v36 = vpop.xlane.xlu0 %261  ;;  %v171_v37 = vpop.xlane.xlu1 %170 }
 0x119   :  { %v266_v38 = vmul.f32 %v262_v36, %v1308_v35  ;;  %v182_v39 = vmul.f32 %v1308_v35, %v171_v37 }
 0x11b   :  { %v268_v40 = vsub.f32 %v256_v15, %v266_v38  ;;  %v1312_v41 = vsub.f32 %v165_v14, %v182_v39 }
 0x11d   :  { %v270_v42 = vmul.f32 %v268_v40, %v268_v40  ;;  %v186_v43 = vmul.f32 %v1312_v41, %v1312_v41 }
 0x11f   :  { %v272_v44 = vsel %vm151_vm0, %v270_v42, 0.0  ;;  %v188_v45 = vsel %vm151_vm0, %v186_v43, 0.0 }
 0x120   :  { %273 = vadd.xlane.f32.xlu2 %v272_v44  ;;  %v265_v46 = vpop.xlane.xlu0 %264  ;;  %189 = vadd.xlane.f32.xlu0 %v188_v45  ;;  %v174_v47 = vpop.xlane.xlu1 %173 }
 0x121   :  { %v267_v48 = vmul.f32 %v265_v46, %v1308_v35  ;;  %v183_v49 = vmul.f32 %v1308_v35, %v174_v47 }
 0x123   :  { %v1320_v50 = vsub.f32 %v258_v21, %v267_v48  ;;  %v1322_v51 = vsub.f32 %v167_v20, %v183_v49 }
 0x125   :  { %v271_v52 = vmul.f32 %v1320_v50, %v1320_v50  ;;  %v187_v53 = vmul.f32 %v1322_v51, %v1322_v51 }
 0x127   :  { %v275_v54 = vsel %vm151_vm0, %v271_v52, 0.0  ;;  %v191_v55 = vsel %vm151_vm0, %v187_v53, 0.0 }
 0x128   :  { %276 = vadd.xlane.f32.xlu2 %v275_v54  ;;  %192 = vadd.xlane.f32.xlu1 %v191_v55  ;;  %v976_v54 = vld [vmem:[%s1487_s8] ss:$0 sm:$0xff]  ;;  %s1215_s8 = smov 16  }
 0x193   :  { %v274_v56 = vpop.xlane.xlu2 %273  ;;  %v190_v57 = vpop.xlane.xlu0 %189 }
 0x194   :  { %v278_v58 = vmul.f32 %v274_v56, %v1308_v35  ;;  %v194_v59 = vmul.f32 %v190_v57, %v1308_v35 }
 0x196   :  { %v280_v60 = vadd.f32 1e-05, %v278_v58  ;;  %v196_v61 = vadd.f32 1e-05, %v194_v59 }
 0x198   :  { %979 = vrsqrt.f32 %v280_v60  ;;  %vm288_vm4 = vweird.f32 %v280_v60  ;;  %vm204_vm5 = vweird.f32 %v196_v61 }
 0x199   :  { %981 = vrsqrt.f32 %v196_v61 }
 0x19b   :  { %v277_v62 = vpop.xlane.xlu2 %276  ;;  %v193_v63 = vpop.xlane.xlu1 %192 }
 0x19c   :  { %v279_v0 = vmul.f32 %v277_v62, %v1308_v35  ;;  %v195_v1 = vmul.f32 %v193_v63, %v1308_v35 }
 0x19e   :  { %v980_v2 = vpop.eup %979  ;;  %v281_v3 = vadd.f32 1e-05, %v279_v0  ;;  %v197_v4 = vadd.f32 1e-05, %v195_v1 }
 0x19f   :  { %v982_v5 = vpop.eup %981  ;;  %v283_v6 = vmul.f32 %v980_v2, %v280_v60  ;;  %vm289_vm2 = vweird.f32 %v980_v2 }
 0x1a0   :  { %v199_v7 = vmul.f32 %v982_v5, %v196_v61  ;;  %983 = vrsqrt.f32 %v281_v3  ;;  %vm205_vm3 = vweird.f32 %v982_v5  ;;  %vm290_vm6 = vmor %vm288_vm4, %vm289_vm2  ;;  %vm298_vm11 = vweird.f32 %v281_v3 }
 0x1a1   :  { %v284_v8 = vmul.f32 %v980_v2, %v283_v6  ;;  %985 = vrsqrt.f32 %v197_v4  ;;  %vm206_vm7 = vmor %vm204_vm5, %vm205_vm3  ;;  %vm214_vm12 = vweird.f32 %v197_v4  ;;  %vm462_vm3 = vcmask 1043456  }
 0x1a2   :  { %v200_v9 = vmul.f32 %v982_v5, %v199_v7 }
 0x1a3   :  { %v285_v10 = vmul.f32 0.5, %v284_v8 }
 0x1a4   :  { %v201_v11 = vmul.f32 0.5, %v200_v9 }
 0x1a5   :  { %v286_v12 = vsub.f32 1.5, %v285_v10 }
 0x1a6   :  { %v984_v13 = vpop.eup %983  ;;  %v202_v14 = vsub.f32 1.5, %v201_v11 }
 0x1a7   :  { %v986_v15 = vpop.eup %985  ;;  %v293_v16 = vmul.f32 %v984_v13, %v281_v3  ;;  %v287_v17 = vmul.f32 %v980_v2, %v286_v12  ;;  %vm299_vm9 = vweird.f32 %v984_v13 }
 0x1a8   :  { %v203_v18 = vmul.f32 %v982_v5, %v202_v14  ;;  %v209_v19 = vmul.f32 %v986_v15, %v197_v4  ;;  %vm215_vm10 = vweird.f32 %v986_v15  ;;  %vm300_vm13 = vmor %vm298_vm11, %vm299_vm9  ;;  %vm881_vm9 = vcmask 195584  }
 0x1a9   :  { %v294_v20 = vmul.f32 %v984_v13, %v293_v16  ;;  %v291_v21 = vsel %vm290_vm6, %v980_v2, %v287_v17  ;;  %vm216_vm14 = vmor %vm214_vm12, %vm215_vm10 }
 0x1aa   :  { %v210_v22 = vmul.f32 %v986_v15, %v209_v19  ;;  %v302_v23 = vmul.f32 %v291_v21, %v268_v40  ;;  %v207_v24 = vsel %vm206_vm7, %v982_v5, %v203_v18  ;;  %vm878_vm7 = vcmask 130048  }
 0x1ab   :  { %v295_v25 = vmul.f32 0.5, %v294_v20  ;;  %v218_v26 = vmul.f32 %v207_v24, %v1312_v41 }
 0x1ac   :  { %v211_v27 = vmul.f32 0.5, %v210_v22  ;;  %v392_v28 = vpack.c.bf16 %v302_v23, %v302_v23 }
 0x1ad   :  { %v296_v29 = vsub.f32 1.5, %v295_v25  ;;  %v388_v30 = vmul.f32 0.35355338, %v218_v26 }
 0x1ae   :  { %v212_v31 = vsub.f32 1.5, %v211_v27  ;;  %v401_v32 = vsel %vm396_vm8, %v392_v28, 0  ;;  %v504_v33 = vunpack.c.l.b16 %v392_v28 }
 0x1af   :  { %410 = vmatpush.bf16.xpose.msra.mxu3 %v401_v32  ;;  %v390_v34 = vpack.c.bf16 %v388_v30, %v388_v30  ;;  %v297_v36 = vmul.f32 %v984_v13, %v296_v29 }
 0x1b0   :  { %v213_v37 = vmul.f32 %v986_v15, %v212_v31  ;;  %v505_v38 = vpack.c.b16 %v504_v33, %v504_v33 }
 0x1b1   :  { %v499_v39 = vunpack.c.l.b16 %v390_v34  ;;  %v301_v40 = vsel %vm300_vm13, %v984_v13, %v297_v36 }
 0x1b2   :  { %506 = vrot.lane.b32.xlu2 %v505_v38, %s1212_s4  ;;  %v303_v41 = vmul.f32 %v301_v40, %v1320_v50  ;;  %v217_v42 = vsel %vm216_vm14, %v986_v15, %v213_v37 }
 0x1b3   :  { %v500_v43 = vpack.c.b16 %v499_v39, %v499_v39  ;;  %v219_v44 = vmul.f32 %v217_v42, %v1322_v51  ;;  %v339_v51 = vpop.f32.mrf.mxu2 }
 0x1b4   :  { %v393_v45 = vpack.c.bf16 %v303_v41, %v303_v41  ;;  %v340_v58 = vadd.f32 %v976_v54, %v339_v51 }
 0x1b5   :  { %501 = vrot.lane.b32.xlu1 %v500_v43, %s1212_s4  ;;  %v389_v46 = vmul.f32 0.35355338, %v219_v44 }
 0x1b6   :  { %935 = vmatmul.msk.bf16.vlgmr.msra.gmra.mxu3 %vm396_vm8, %v390_v34  ;;  %v420_v47 = vsel %vm396_vm8, %v393_v45, 0  ;;  %v533_v48 = vunpack.c.l.b16 %v393_v45  ;;  %v344_v59 = vsel %vm151_vm0, %v340_v58, 0.0 }
 0x1b7   :  { %429 = vmatpush.bf16.xpose.msrb.mxu0 %v420_v47  ;;  %v391_v49 = vpack.c.bf16 %v389_v46, %v389_v46 }
 0x1b8   :  { %v534_v52 = vpack.c.b16 %v533_v48, %v533_v48 }
 0x1b9   :  { %v528_v53 = vunpack.c.l.b16 %v391_v49 }
 0x1ba   :  { %535 = vrot.lane.b32.xlu0 %v534_v52, %s1212_s4 }
 0x1bb   :  { %v529_v50 = vpack.c.b16 %v528_v53, %v528_v53  ;;  %v341_v55 = vpop.f32.mrf.mxu2 }
 0x1bc   :  { %v342_v56 = vadd.f32 %v976_v54, %v341_v55 }
 0x1bd   :  { %628 = vrot.lane.b32.xlu1 %v500_v43, %s1213_s6  ;;  %530 = vrot.lane.b32.xlu2 %v529_v50, %s1212_s4 }
 0x1be   :  { %936 = vmatmul.msk.bf16.vlgmr.msrb.gmra.mxu0 %vm396_vm8, %v391_v49  ;;  %v347_v57 = vsel %vm151_vm0, %v342_v56, 0.0 }
 0x1c2   :  { %630 = vrot.lane.b32.xlu0 %v505_v38, %s1213_s6 }
 0x1c5   :  { %765 = vrot.lane.b32.xlu1 %v534_v52, %s1214_s1  ;;  %653 = vrot.lane.b32.xlu2 %v534_v52, %s1213_s6 }
 0x1ca   :  { %651 = vrot.lane.b32.xlu0 %v529_v50, %s1213_s6 }
 0x1cd   :  { %742 = vrot.lane.b32.xlu2 %v505_v38, %s1214_s1 }
 0x1d2   :  { %740 = vrot.lane.b32.xlu0 %v500_v43, %s1214_s1 }
 0x1d5   :  { %763 = vrot.lane.b32.xlu2 %v529_v50, %s1214_s1 }
 0x1ef   :  { %348 = vadd.xlane.f32.xlu1 %v347_v57 }
 0x1fc   :  { %345 = vadd.xlane.f32.xlu0 %v344_v59 }
 0x20c   :  { %v507_v60 = vpop.permute.xlu2 %506 }
 0x20d   :  { %v512_v61 = vsel %vm396_vm8, %v507_v60, 0 }
 0x20e   :  { %521 = vmatpush.bf16.xpose.msrb.mxu3 %v512_v61 }
 0x217   :  { %v531_v62 = vpop.permute.xlu2 %530 }
 0x21f   :  { %v654_v0 = vpop.permute.xlu2 %653 }
 0x220   :  { %v659_v3 = vsel %vm396_vm8, %v654_v0, 0 }
 0x227   :  { %v502_v63 = vpop.permute.xlu1 %501  ;;  %v743_v5 = vpop.permute.xlu2 %742 }
 0x228   :  { %939 = vmatmul.msk.bf16.vlgmr.msrb.gmra.mxu3 %vm396_vm8, %v502_v63  ;;  %v748_v8 = vsel %vm396_vm8, %v743_v5, 0 }
 0x22c   :  { %v536_v1 = vpop.permute.xlu0 %535 }
 0x22d   :  { %v541_v2 = vsel %vm396_vm8, %v536_v1, 0 }
 0x22e   :  { %550 = vmatpush.bf16.xpose.msra.mxu0 %v541_v2 }
 0x22f   :  { %v629_v4 = vpop.permute.xlu1 %628  ;;  %v764_v19 = vpop.permute.xlu2 %763 }
 0x234   :  { %v631_v6 = vpop.permute.xlu0 %630 }
 0x235   :  { %v636_v7 = vsel %vm396_vm8, %v631_v6, 0  ;;  %940 = vmatmul.msk.bf16.vlgmr.msra.gmra.mxu0 %vm396_vm8, %v531_v62 }
 0x236   :  { %668 = vmatpush.bf16.xpose.msrb.mxu0 %v659_v3  ;;  %645 = vmatpush.bf16.xpose.msra.mxu3 %v636_v7 }
 0x237   :  { %v766_v9 = vpop.permute.xlu1 %765 }
 0x238   :  { %v771_v10 = vsel %vm396_vm8, %v766_v9, 0 }
 0x239   :  { %v1366_v11 = vpop.f32.mrf.mxu3 }
 0x23a   :  { %v435_v12 = vsel %vm396_vm8, %v1366_v11, -inf }
 0x23b   :  { %436 = vmax.xlane.f32.xlu0 %v435_v12  ;;  %v431_v13 = vpop.f32.mrf.mxu0 }
 0x23c   :  { %v438_v14 = vsel %vm396_vm8, %v431_v13, -inf  ;;  %v652_v16 = vpop.permute.xlu0 %651 }
 0x23d   :  { %439 = vmax.xlane.f32.xlu2 %v438_v14  ;;  %943 = vmatmul.msk.bf16.vlgmr.msra.gmra.mxu3 %vm396_vm8, %v629_v4 }
 0x23e   :  { %757 = vmatpush.bf16.xpose.msrb.mxu3 %v748_v8  ;;  %780 = vmatpush.bf16.xpose.msra.mxu0 %v771_v10 }
 0x241   :  { %v414_v15 = vpop.f32.mrf.mxu3 }
 0x243   :  { %v433_v17 = vpop.f32.mrf.mxu0 }
 0x244   :  { %v741_v18 = vpop.permute.xlu0 %740 }
 0x245   :  { %944 = vmatmul.msk.bf16.vlgmr.msrb.gmra.mxu0 %vm396_vm8, %v652_v16 }
 0x24d   :  { %947 = vmatmul.msk.bf16.vlgmr.msrb.gmra.mxu3 %vm396_vm8, %v741_v18 }
 0x255   :  { %948 = vmatmul.msk.bf16.vlgmr.msra.gmra.mxu0 %vm396_vm8, %v764_v19 }
 0x262   :  { %v349_v20 = vpop.xlane.xlu1 %348 }
 0x263   :  { %v351_v21 = vmul.f32 %v349_v20, %v1308_v35 }
 0x265   :  { %v353_v22 = vsub.f32 %v342_v56, %v351_v21 }
 0x267   :  { %v355_v23 = vmul.f32 %v353_v22, %v353_v22 }
 0x269   :  { %v359_v24 = vsel %vm151_vm0, %v355_v23, 0.0 }
 0x26a   :  { %360 = vadd.xlane.f32.xlu1 %v359_v24 }
 0x26f   :  { %v346_v25 = vpop.xlane.xlu0 %345 }
 0x270   :  { %v350_v26 = vmul.f32 %v346_v25, %v1308_v35 }
 0x272   :  { %v1378_v27 = vsub.f32 %v340_v58, %v350_v26 }
 0x274   :  { %v354_v28 = vmul.f32 %v1378_v27, %v1378_v27 }
 0x276   :  { %v356_v29 = vsel %vm151_vm0, %v354_v28, 0.0 }
 0x277   :  { %357 = vadd.xlane.f32.xlu2 %v356_v29 }
 0x2ab   :  { %v1383_v30 = vpop.f32.mrf.mxu3 }
 0x2ac   :  { %v556_v31 = vsel %vm396_vm8, %v1383_v30, -inf }
 0x2ad   :  { %557 = vmax.xlane.f32.xlu0 %v556_v31 }
 0x2ae   :  { %v437_v17 = vpop.xlane.xlu0 %436 }
 0x2af   :  { %v441_v18 = vsub.f32 %v1366_v11, %v437_v17 }
 0x2b0   :  { %v440_v32 = vpop.xlane.xlu2 %439 }
 0x2b1   :  { %v442_v33 = vsub.f32 %v431_v13, %v440_v32  ;;  %v443_v19 = vmul.f32 1.442695, %v441_v18 }
 0x2b2   :  { %v1387_v34 = vpop.f32.mrf.mxu0 }
 0x2b3   :  { %v445_v36 = vmul.f32 1.442695, %v442_v33  ;;  %v525_v37 = vpop.f32.mrf.mxu3  ;;  %v559_v38 = vsel %vm396_vm8, %v1387_v34, -inf }
 0x2b4   :  { %560 = vmax.xlane.f32.xlu1 %v559_v38 }
 0x2b5   :  { %987 = vpow2.f32 %v445_v36 }
 0x2ba   :  { %v554_v39 = vpop.f32.mrf.mxu0 }
 0x2bb   :  { %v1391_v40 = vpop.eup %987 }
 0x2bc   :  { %v450_v41 = vsel %vm396_vm8, %v1391_v40, 0.0 }
 0x2bd   :  { %451 = vadd.xlane.f32.xlu2 %v450_v41 }
 0x2c0   :  { %v1395_v42 = vpop.f32.mrf.mxu3 }
 0x2c1   :  { %v674_v43 = vsel %vm396_vm8, %v1395_v42, -inf }
 0x2c2   :  { %v1399_v44 = vpop.f32.mrf.mxu0  ;;  %675 = vmax.xlane.f32.xlu1 %v674_v43 }
 0x2c3   :  { %v677_v45 = vsel %vm396_vm8, %v1399_v44, -inf }
 0x2c5   :  { %678 = vmax.xlane.f32.xlu2 %v677_v45 }
 0x2c8   :  { %v649_v46 = vpop.f32.mrf.mxu3 }
 0x2ca   :  { %v672_v47 = vpop.f32.mrf.mxu0 }
 0x2d0   :  { %v1403_v48 = vpop.f32.mrf.mxu3 }
 0x2d1   :  { %v786_v49 = vsel %vm396_vm8, %v1403_v48, -inf }
 0x2d2   :  { %v1407_v52 = vpop.f32.mrf.mxu0  ;;  %787 = vmax.xlane.f32.xlu1 %v786_v49 }
 0x2d3   :  { %v789_v29 = vsel %vm396_vm8, %v1407_v52, -inf }
 0x2d8   :  { %v761_v53 = vpop.f32.mrf.mxu3 }
 0x2da   :  { %v784_v50 = vpop.f32.mrf.mxu0 }
 0x2dd   :  { %v361_v51 = vpop.xlane.xlu1 %360 }
 0x2de   :  { %v363_v54 = vmul.f32 %v361_v51, %v1308_v35 }
 0x2e0   :  { %v365_v55 = vadd.f32 1e-05, %v363_v54 }
 0x2e2   :  { %989 = vrsqrt.f32 %v365_v55  ;;  %vm382_vm1 = vweird.f32 %v365_v55 }
 0x2e8   :  { %v990_v56 = vpop.eup %989 }
 0x2e9   :  { %v377_v57 = vmul.f32 %v990_v56, %v365_v55  ;;  %vm383_vm15 = vweird.f32 %v990_v56 }
 0x2ea   :  { %v358_v58 = vpop.xlane.xlu2 %357  ;;  %vm384_vm2 = vmor %vm382_vm1, %vm383_vm15 }
 0x2eb   :  { %v378_v59 = vmul.f32 %v990_v56, %v377_v57  ;;  %v362_v60 = vmul.f32 %v358_v58, %v1308_v35 }
 0x2ed   :  { %v379_v61 = vmul.f32 0.5, %v378_v59  ;;  %v364_v62 = vadd.f32 1e-05, %v362_v60 }
 0x2ef   :  { %v380_v63 = vsub.f32 1.5, %v379_v61  ;;  %991 = vrsqrt.f32 %v364_v62  ;;  %vm372_vm5 = vweird.f32 %v364_v62 }
 0x2f0   :  { %993 = vpow2.f32 %v443_v19 }
 0x2f1   :  { %v381_v0 = vmul.f32 %v990_v56, %v380_v63 }
 0x2f3   :  { %v385_v1 = vsel %vm384_vm2, %v990_v56, %v381_v0 }
 0x2f4   :  { %v387_v2 = vmul.f32 %v385_v1, %v353_v22 }
 0x2f5   :  { %v992_v3 = vpop.eup %991 }
 0x2f6   :  { %v367_v4 = vmul.f32 %v992_v3, %v364_v62  ;;  %v395_v5 = vpack.c.bf16 %v387_v2, %v387_v2  ;;  %vm373_vm4 = vweird.f32 %v992_v3  ;;  %v994_v22 = vpop.eup %993 }
 0x2f7   :  { %vm374_vm6 = vmor %vm372_vm5, %vm373_vm4  ;;  %v447_v24 = vsel %vm396_vm8, %v994_v22, 0.0 }
 0x2f8   :  { %v368_v6 = vmul.f32 %v992_v3, %v367_v4  ;;  %v483_v7 = vsel %vm462_vm3, %v395_v5, 0  ;;  %v605_v8 = vunpack.c.l.b16 %v395_v5 }
 0x2f9   :  { %492 = vmatpush.bf16.msrb.mxu2 %v483_v7 }
 0x2fa   :  { %v369_v35 = vmul.f32 0.5, %v368_v6  ;;  %v1412_v9 = vpack.c.b16 %v605_v8, %v605_v8 }
 0x2fc   :  { %v370_v10 = vsub.f32 1.5, %v369_v35  ;;  %607 = vrot.lane.b32.xlu0 %v1412_v9, %s1212_s4 }
 0x2fe   :  { %v371_v12 = vmul.f32 %v992_v3, %v370_v10 }
 0x300   :  { %v375_v13 = vsel %vm374_vm6, %v992_v3, %v371_v12 }
 0x301   :  { %v386_v14 = vmul.f32 %v375_v13, %v1378_v27 }
 0x303   :  { %v394_v15 = vpack.c.bf16 %v386_v14, %v386_v14 }
 0x305   :  { %v464_v16 = vsel %vm462_vm3, %v394_v15, 0  ;;  %v581_v37 = vunpack.c.l.b16 %v394_v15 }
 0x306   :  { %473 = vmatpush.bf16.msrb.mxu1 %v464_v16 }
 0x307   :  { %v582_v38 = vpack.c.b16 %v581_v37, %v581_v37 }
 0x320   :  { %v558_v20 = vpop.xlane.xlu0 %557 }
 0x321   :  { %v562_v21 = vsub.f32 %v1383_v30, %v558_v20 }
 0x323   :  { %v564_v23 = vmul.f32 1.442695, %v562_v21 }
 0x325   :  { %995 = vpow2.f32 %v564_v23 }
 0x326   :  { %448 = vadd.xlane.f32.xlu0 %v447_v24 }
 0x327   :  { %v561_v25 = vpop.xlane.xlu1 %560 }
 0x328   :  { %v563_v26 = vsub.f32 %v1387_v34, %v561_v25 }
 0x32a   :  { %v566_v27 = vmul.f32 1.442695, %v563_v26 }
 0x32b   :  { %v1422_v28 = vpop.eup %995 }
 0x32c   :  { %997 = vpow2.f32 %v566_v27  ;;  %v568_v11 = vsel %vm396_vm8, %v1422_v28, 0.0 }
 0x32d   :  { %569 = vadd.xlane.f32.xlu1 %v568_v11 }
 0x32e   :  { %790 = vmax.xlane.f32.xlu0 %v789_v29 }
 0x330   :  { %v452_v30 = vpop.xlane.xlu2 %451 }
 0x331   :  { %999 = vrcp.f32 %v452_v30 }
 0x332   :  { %v998_v31 = vpop.eup %997 }
 0x333   :  { %v571_v32 = vsel %vm396_vm8, %v998_v31, 0.0 }
 0x334   :  { %572 = vadd.xlane.f32.xlu2 %v571_v32 }
 0x335   :  { %v676_v39 = vpop.xlane.xlu1 %675 }
 0x336   :  { %v680_v45 = vsub.f32 %v1395_v42, %v676_v39 }
 0x337   :  { %v1000_v33 = vpop.eup %999 }
 0x338   :  { %v456_v34 = vmul.f32 %v1000_v33, %v1391_v40  ;;  %v682_v40 = vmul.f32 1.442695, %v680_v45  ;;  %v679_v47 = vpop.xlane.xlu2 %678 }
 0x339   :  { %v681_v49 = vsub.f32 %v1399_v44, %v679_v47 }
 0x33a   :  { %v458_v36 = vpack.c.bf16 %v456_v34, %v456_v34 }
 0x33b   :  { %v684_v50 = vmul.f32 1.442695, %v681_v49 }
 0x33c   :  { %938 = vmatmul.msk.bf16.vlgmr.msrb.gmra.mxu2 %vm396_vm8, %v458_v36 }
 0x342   :  { %719 = vrot.lane.b32.xlu0 %v1412_v9, %s1213_s6 }
 0x345   :  { %v788_v41 = vpop.xlane.xlu1 %787 }
 0x346   :  { %698 = vrot.lane.b32.xlu1 %v582_v38, %s1213_s6  ;;  %v792_v43 = vsub.f32 %v1403_v48, %v788_v41 }
 0x348   :  { %v794_v46 = vmul.f32 1.442695, %v792_v43 }
 0x34a   :  { %1001 = vpow2.f32 %v794_v46 }
 0x34b   :  { %1003 = vpow2.f32 %v682_v40 }
 0x34c   :  { %583 = vrot.lane.b32.xlu2 %v582_v38, %s1212_s4  ;;  %1005 = vpow2.f32 %v684_v50 }
 0x350   :  { %v1438_v53 = vpop.eup %1001 }
 0x351   :  { %v798_v51 = vsel %vm396_vm8, %v1438_v53, 0.0  ;;  %v1004_v54 = vpop.eup %1003 }
 0x352   :  { %v686_v42 = vsel %vm396_vm8, %v1004_v54, 0.0  ;;  %v1006_v56 = vpop.eup %1005 }
 0x353   :  { %v689_v57 = vsel %vm396_vm8, %v1006_v56, 0.0 }
 0x36c   :  { %799 = vadd.xlane.f32.xlu0 %v798_v51 }
 0x36e   :  { %v608_v55 = vpop.permute.xlu0 %607 }
 0x36f   :  { %v613_v48 = vsel %vm462_vm3, %v608_v55, 0 }
 0x370   :  { %622 = vmatpush.bf16.msra.mxu2 %v613_v48  ;;  %687 = vadd.xlane.f32.xlu1 %v686_v42 }
 0x378   :  { %690 = vadd.xlane.f32.xlu1 %v689_v57 }
 0x391   :  { %831 = vrot.lane.b32.xlu1 %v1412_v9, %s1214_s1 }
 0x399   :  { %v449_v44 = vpop.xlane.xlu0 %448  ;;  %810 = vrot.lane.b32.xlu1 %v582_v38, %s1214_s1 }
 0x39a   :  { %1007 = vrcp.f32 %v449_v44 }
 0x3a0   :  { %v1008_v58 = vpop.eup %1007  ;;  %v570_v61 = vpop.xlane.xlu1 %569 }
 0x3a1   :  { %v455_v59 = vmul.f32 %v1008_v58, %v994_v22  ;;  %v791_v60 = vpop.xlane.xlu0 %790  ;;  %1009 = vrcp.f32 %v570_v61 }
 0x3a2   :  { %v793_v62 = vsub.f32 %v1407_v52, %v791_v60 }
 0x3a3   :  { %v457_v63 = vpack.c.bf16 %v455_v59, %v455_v59 }
 0x3a4   :  { %v796_v0 = vmul.f32 1.442695, %v793_v62 }
 0x3a5   :  { %937 = vmatmul.msk.bf16.vlgmr.msrb.gmra.mxu1 %vm396_vm8, %v457_v63 }
 0x3a6   :  { %1011 = vpow2.f32 %v796_v0 }
 0x3a7   :  { %v573_v1 = vpop.xlane.xlu2 %572  ;;  %v1010_v2 = vpop.eup %1009 }
 0x3a8   :  { %1013 = vrcp.f32 %v573_v1  ;;  %v576_v6 = vmul.f32 %v1010_v2, %v1422_v28 }
 0x3aa   :  { %v578_v9 = vpack.c.bf16 %v576_v6, %v576_v6 }
 0x3ac   :  { %v1012_v3 = vpop.eup %1011 }
 0x3ad   :  { %v801_v4 = vsel %vm396_vm8, %v1012_v3, 0.0 }
 0x3ae   :  { %v1014_v5 = vpop.eup %1013  ;;  %802 = vadd.xlane.f32.xlu2 %v801_v4 }
 0x3af   :  { %v577_v7 = vmul.f32 %v1014_v5, %v998_v31  ;;  %v584_v8 = vpop.permute.xlu2 %583 }
 0x3b0   :  { %v589_v52 = vsel %vm462_vm3, %v584_v8, 0 }
 0x3b1   :  { %v579_v35 = vpack.c.bf16 %v577_v7, %v577_v7  ;;  %598 = vmatpush.bf16.msra.mxu1 %v589_v52 }
 0x3b3   :  { %942 = vmatmul.msk.bf16.vlgmr.msra.gmra.mxu2 %vm396_vm8, %v579_v35 }
 0x3b4   :  { %v720_v10 = vpop.permute.xlu0 %719 }
 0x3b5   :  { %v725_v12 = vsel %vm462_vm3, %v720_v10, 0  ;;  %941 = vmatmul.msk.bf16.vlgmr.msra.gmra.mxu1 %vm396_vm8, %v578_v9 }
 0x3b6   :  { %734 = vmatpush.bf16.msrb.mxu2 %v725_v12 }
 0x3b8   :  { %v699_v13 = vpop.permute.xlu1 %698 }
 0x3b9   :  { %v704_v14 = vsel %vm462_vm3, %v699_v13, 0 }
 0x3ba   :  { %713 = vmatpush.bf16.msrb.mxu1 %v704_v14 }
 0x3bf   :  { %v1457_v15 = vpop.f32.mrf.mxu2 }
 0x3c7   :  { %v496_v16 = vpop.f32.mrf.mxu2 }
 0x3df   :  { %v800_v25 = vpop.xlane.xlu0 %799 }
 0x3e3   :  { %v688_v17 = vpop.xlane.xlu1 %687 }
 0x3e4   :  { %1015 = vrcp.f32 %v688_v17 }
 0x3ea   :  { %v1016_v18 = vpop.eup %1015 }
 0x3eb   :  { %v694_v19 = vmul.f32 %v1016_v18, %v1004_v54  ;;  %v691_v20 = vpop.xlane.xlu1 %690 }
 0x3ec   :  { %1017 = vrcp.f32 %v691_v20 }
 0x3ed   :  { %v696_v21 = vpack.c.bf16 %v694_v19, %v694_v19  ;;  %1019 = vrcp.f32 %v800_v25 }
 0x3ef   :  { %945 = vmatmul.msk.bf16.vlgmr.msrb.gmra.mxu1 %vm396_vm8, %v696_v21 }
 0x3f2   :  { %v1018_v22 = vpop.eup %1017 }
 0x3f3   :  { %v695_v23 = vmul.f32 %v1018_v22, %v1006_v56  ;;  %v1020_v28 = vpop.eup %1019 }
 0x3f4   :  { %v806_v11 = vmul.f32 %v1020_v28, %v1438_v53 }
 0x3f5   :  { %v697_v24 = vpack.c.bf16 %v695_v23, %v695_v23 }
 0x3f6   :  { %v808_v31 = vpack.c.bf16 %v806_v11, %v806_v11 }
 0x3f7   :  { %946 = vmatmul.msk.bf16.vlgmr.msrb.gmra.mxu2 %vm396_vm8, %v697_v24 }
 0x403   :  { %v832_v26 = vpop.permute.xlu1 %831 }
 0x404   :  { %v837_v27 = vsel %vm462_vm3, %v832_v26, 0 }
 0x405   :  { %846 = vmatpush.bf16.msra.mxu2 %v837_v27 }
 0x40b   :  { %v811_v29 = vpop.permute.xlu1 %810 }
 0x40c   :  { %v816_v30 = vsel %vm462_vm3, %v811_v29, 0 }
 0x40d   :  { %825 = vmatpush.bf16.msra.mxu1 %v816_v30 }
 0x410   :  { %949 = vmatmul.msk.bf16.vlgmr.msra.gmra.mxu1 %vm396_vm8, %v808_v31 }
 0x421   :  { %v803_v32 = vpop.xlane.xlu2 %802 }
 0x422   :  { %1021 = vrcp.f32 %v803_v32  ;;  %v475_v33 = vpop.f32.mrf.mxu1 }
 0x428   :  { %v1022_v34 = vpop.eup %1021 }
 0x429   :  { %v807_v36 = vmul.f32 %v1022_v34, %v1012_v3 }
 0x42a   :  { %v477_v37 = vpop.f32.mrf.mxu1 }
 0x42b   :  { %v809_v38 = vpack.c.bf16 %v807_v36, %v807_v36 }
 0x42d   :  { %950 = vmatmul.msk.bf16.vlgmr.msra.gmra.mxu2 %vm396_vm8, %v809_v38 }
 0x432   :  { %v600_v39 = vpop.f32.mrf.mxu1 }
 0x433   :  { %854 = vrot.lane.b32.xlu1 %v600_v39, %s1203_s18 }
 0x436   :  { %v624_v41 = vpop.f32.mrf.mxu2 }
 0x437   :  { %856 = vrot.lane.b32.xlu2 %v624_v41, %s1203_s18 }
 0x43a   :  { %v602_v43 = vpop.f32.mrf.mxu1 }
 0x43e   :  { %v626_v45 = vpop.f32.mrf.mxu2 }
 0x46c   :  { %v715_v46 = vpop.f32.mrf.mxu1 }
 0x46d   :  { %862 = vrot.lane.b32.xlu0 %v715_v46, %s1215_s8 }
 0x474   :  { %v717_v40 = vpop.f32.mrf.mxu1 }
 0x47a   :  { %v736_v47 = vpop.f32.mrf.mxu2 }
 0x47b   :  { %864 = vrot.lane.b32.xlu1 %v736_v47, %s1215_s8 }
 0x482   :  { %v738_v49 = vpop.f32.mrf.mxu2 }
 0x48d   :  { %v827_v53 = vpop.f32.mrf.mxu1 }
 0x48e   :  { %870 = vrot.lane.b32.xlu1 %v827_v53, %s1216_s24 }
 0x491   :  { %v857_v59 = vpop.permute.xlu2 %856 }
 0x492   :  { %v877_v60 = vsel %vm396_vm8, %v1457_v15, %v857_v59 }
 0x495   :  { %v829_v50 = vpop.f32.mrf.mxu1 }
 0x4a5   :  { %v855_v55 = vpop.permute.xlu1 %854 }
 0x4a6   :  { %v876_v56 = vsel %vm396_vm8, %v475_v33, %v855_v55 }
 0x4b0   :  { %v848_v51 = vpop.f32.mrf.mxu2 }
 0x4b1   :  { %872 = vrot.lane.b32.xlu1 %v848_v51, %s1216_s24 }
 0x4b8   :  { %v850_v54 = vpop.f32.mrf.mxu2 }
 0x4df   :  { %v863_v42 = vpop.permute.xlu0 %862 }
 0x4e0   :  { %v879_v57 = vsel %vm878_vm7, %v876_v56, %v863_v42 }
 0x4ed   :  { %v865_v48 = vpop.permute.xlu1 %864 }
 0x4ee   :  { %v880_v61 = vsel %vm878_vm7, %v877_v60, %v865_v48 }
 0x500   :  { %v871_v44 = vpop.permute.xlu1 %870 }
 0x501   :  { %v882_v58 = vsel %vm881_vm9, %v879_v57, %v871_v44 }
 0x502   :  { %884 = vst.msk [vmem:[#allocation13] sm:$0xff] %vm151_vm0, %v882_v58 }
 0x523   :  { %v873_v62 = vpop.permute.xlu1 %872 }
 0x524   :  { %v883_v63 = vsel %vm881_vm9, %v880_v61, %v873_v62 }
 0x525   :  { %885 = vst.msk [vmem:[#allocation13 + $0x8] sm:$0xff] %vm151_vm0, %v883_v63 }
 0x526   :  { %898 = dma.vmem_to_hbm [thread:$0]  %s891_s3, 256, %s893_s28, [#allocation4], %s1202_s17, %s1202_s17, %s1203_s18  }
 0x527   :  { %1199 = dma.done.wait [#allocation4], 256  }
 0x528   :  { %1200 = vsyncadd [#allocation4], 4294967040 }
 0x529   :  { %903 = vsyncpa [#allocation3], 1 }
 0x52a   :  { %904 = vsyncpa [#allocation6], 1 }
 0x52b   :  { %905 = vsyncpa [#allocation9], 1 }
 0x52c   :  { %906 = vsyncpa [#allocation12], 1 }
 0x52d   :  { %907 = vsyncpa [#allocation4], 1 }

</bundles_post_ra>
